<compile_context>
chip_gen: v5e
topology: v5e:2x2
jax: 0.10.0
libtpu: 0.0.40
codegen_flags: <defaults>
</compile_context>

<pallas_src>
import functools
import math

import numpy as np
import jax
import jax.numpy as jnp
from jax.experimental import pallas as pl
from jax.experimental.pallas import tpu as pltpu

_SUB = 32  # sublane-group height of the lane-dense view (dtype-agnostic: 32 % {8,16,32} == 0)


# ---------------------------------------------------------------------------
# Hardware probes (guarded: fall back to conservative defaults).
# ---------------------------------------------------------------------------
def _vmem_capacity_bytes() -> int:
    try:
        cap = int(pltpu.get_tpu_info().vmem_capacity_bytes)
        if cap > 0:
            return cap
    except Exception:
        pass
    return 64 * 1024 * 1024  # v7x physical per-TensorCore (most conservative)


def _num_tensorcores() -> int:
    """2 on v7x (per-TC HBM bandwidth), 1 on v5e/v6e (single TensorCore)."""
    try:
        info = pltpu.get_tpu_info()
        for name in ("num_tensorcores", "tensorcore_count", "num_cores_per_chip", "num_cores"):
            v = getattr(info, name, None)
            if isinstance(v, int) and v >= 1:
                return max(1, min(2, v))
    except Exception:
        pass
    try:
        kind = jax.devices()[0].device_kind.lower()
        if "7" in kind:  # e.g. "tpu7x"
            return 2
    except Exception:
        pass
    return 1


# ---------------------------------------------------------------------------
# Kernel: accumulate per-(sublane, lane) sums of squared error.
# ---------------------------------------------------------------------------
def _sumsq_kernel(pred_ref, targ_ref, out_ref):
    # out_ref (SUB, L) is the resident accumulator for this core's grid run.
    @pl.when(pl.program_id(1) == 0)
    def _init():
        out_ref[...] = jnp.zeros_like(out_ref)

    p = pred_ref[...].astype(jnp.float32)  # (tile_g, SUB, L), lane-dense
    t = targ_ref[...].astype(jnp.float32)
    d = p - t
    # Sum over the leading (non-tiled) axis: pure VPU vreg adds, no XLU.
    out_ref[...] += jnp.sum(d * d, axis=0)


# ---------------------------------------------------------------------------
# Per-task sum of squared errors (Pallas forward + custom VJP).
# ---------------------------------------------------------------------------
def _task_sumsq_impl(predictions, targets, block_elems_cap):
    """predictions/targets: (B, T). Returns float32 (T,) sum of squared errors."""
    assert predictions.shape == targets.shape and predictions.ndim == 2
    B, T = predictions.shape
    total = B * T
    itemsize = predictions.dtype.itemsize

    # Lane-dense zero-copy view of the native row-major buffer:
    #   flat[f] = element (b=f//T, t=f%T); viewed as (groups, SUB, L) with
    #   L = lcm(T, 128) so task(lane) = lane % T, independent of the row.
    L = (T * 128) // math.gcd(T, 128)
    G = _SUB * L  # elements per (SUB, L) group

    groups_needed = max(1, pl.cdiv(total, G))
    ncores = max(1, min(_num_tensorcores(), groups_needed))

    # Block sizing: element cap derived from VMEM (inputs double-buffered +
    # elementwise f32 temporaries ~ 12 block-equivalents of 4 bytes each).
    vmem_limit = min(int(_vmem_capacity_bytes() * 0.75), 48 * 1024 * 1024)
    cap_elems = max(1, vmem_limit // 48)          # ~1M f32 elems at 48 MiB
    if block_elems_cap is not None:
        cap_elems = max(1, min(cap_elems, int(block_elems_cap)))
    tile_g_budget = max(1, cap_elems // G)

    per_core_groups = pl.cdiv(groups_needed, ncores)
    steps = pl.cdiv(per_core_groups, min(tile_g_budget, per_core_groups))
    tile_g = pl.cdiv(per_core_groups, steps)      # balanced block size
    total_groups = ncores * steps * tile_g

    flat_p = predictions.reshape(-1)
    flat_t = targets.reshape(-1)
    padded_total = total_groups * G
    if padded_total != total:
        # Only when B*T is not grid-aligned: zero padding adds nothing to the
        # sum of squares (one extra copy in the ragged case only).
        pad = padded_total - total
        flat_p = jnp.pad(flat_p, (0, pad))
        flat_t = jnp.pad(flat_t, (0, pad))
    x_p = flat_p.reshape(total_groups, _SUB, L)
    x_t = flat_t.reshape(total_groups, _SUB, L)

    partials = pl.pallas_call(
        _sumsq_kernel,
        out_shape=jax.ShapeDtypeStruct((ncores, _SUB, L), jnp.float32),
        grid=(ncores, steps),
        in_specs=[
            pl.BlockSpec((tile_g, _SUB, L), lambda c, i: (c * steps + i, 0, 0)),
            pl.BlockSpec((tile_g, _SUB, L), lambda c, i: (c * steps + i, 0, 0)),
        ],
        out_specs=pl.BlockSpec((None, _SUB, L), lambda c, i: (c, 0, 0)),
        compiler_params=pltpu.CompilerParams(
            dimension_semantics=("parallel", "arbitrary"),
            vmem_limit_bytes=vmem_limit),
        cost_estimate=pl.CostEstimate(
            flops=3 * padded_total,
            transcendentals=0,
            bytes_accessed=2 * padded_total * itemsize + ncores * _SUB * L * 4),
    )(x_p, x_t)

    # Tiny O(L) epilogue: combine per-core / per-sublane / per-lane partials,
    # then fold lanes onto tasks (lane l belongs to task l % T since L % T == 0).
    lane_sums = jnp.sum(partials, axis=(0, 1))                 # (L,)
    return jnp.sum(lane_sums.reshape(L // T, T), axis=0)       # (T,)


_task_sumsq = jax.custom_vjp(_task_sumsq_impl, nondiff_argnums=(2,))


def _task_sumsq_fwd(predictions, targets, block_elems_cap):
    return _task_sumsq_impl(predictions, targets, block_elems_cap), (predictions, targets)


def _task_sumsq_bwd(block_elems_cap, res, g):
    pred, targ = res
    diff = pred.astype(jnp.float32) - targ.astype(jnp.float32)
    gp = 2.0 * diff * g[None, :].astype(jnp.float32)
    return gp.astype(pred.dtype), (-gp).astype(targ.dtype)


_task_sumsq.defvjp(_task_sumsq_fwd, _task_sumsq_bwd)


# ---------------------------------------------------------------------------
# AdaptiveLoss.forward equivalent.
# ---------------------------------------------------------------------------
def adaptive_loss(predictions, targets, log_vars, *, block_elems_cap=None):
    """predictions/targets: (B, T); log_vars: (T,). Matches AdaptiveLoss.forward."""
    B, T = predictions.shape
    assert log_vars.shape == (T,)

    ssq = _task_sumsq(predictions, targets, block_elems_cap)   # (T,) f32
    lv = log_vars.astype(jnp.float32)
    task_losses = ssq / jnp.float32(B)                         # per-task MSE
    precisions = jnp.exp(-lv)
    total_loss = jnp.sum(precisions * task_losses + lv)

    return {
        "total_loss": total_loss,
        "task_losses": task_losses,                            # (T,)
        "task_weights": jax.lax.stop_gradient(precisions),     # detached exp(-log_vars)
        "uncertainties": jax.lax.stop_gradient(lv),            # detached log_vars
    }


if __name__ == "__main__":
    num_tasks = 3
    init_weight = 1.0
    batch = 8

    # nn.Parameter(ones(T) * log(init_weight)) equivalent.
    log_vars = jnp.ones((num_tasks,), dtype=jnp.float32) * float(np.log(init_weight))

    key = jax.random.PRNGKey(0)
    kp, kt = jax.random.split(key)
    predictions = jax.random.normal(kp, (batch, num_tasks), dtype=jnp.float32)
    targets = jax.random.normal(kt, (batch, num_tasks), dtype=jnp.float32)

    out = adaptive_loss(predictions, targets, log_vars)
    jax.block_until_ready(out)

    def reference(pred, targ, lv):
        diff = pred.astype(jnp.float32) - targ.astype(jnp.float32)
        mse = jnp.mean(diff * diff, axis=0)
        total = jnp.sum(jnp.exp(-lv) * mse + lv)
        return mse, total

    mse_ref, total_ref = reference(predictions, targets, log_vars)
    assert np.allclose(np.asarray(out["task_losses"]), np.asarray(mse_ref),
                       rtol=1e-5, atol=1e-6)
    assert np.allclose(float(out["total_loss"]), float(total_ref),
                       rtol=1e-5, atol=1e-6)
    assert np.allclose(np.asarray(out["task_weights"]),
                       np.exp(-np.asarray(log_vars)), rtol=1e-6, atol=1e-7)

    # Exercise multi-step accumulation, the ragged/pad path, a different task
    # count, and bf16 streaming (block_elems_cap=1 forces one group per step).
    for b, t, dtype, cap in ((8192, 3, jnp.float32, 1),
                             (5000, 3, jnp.float32, 1),
                             (4096, 4, jnp.float32, 1),
                             (8192, 3, jnp.bfloat16, None)):
        lv2 = jnp.full((t,), 0.25, dtype=jnp.float32)
        kp2, kt2 = jax.random.split(jax.random.PRNGKey(b + t))
        p2 = jax.random.normal(kp2, (b, t), dtype=jnp.float32).astype(dtype)
        t2 = jax.random.normal(kt2, (b, t), dtype=jnp.float32).astype(dtype)
        o2 = adaptive_loss(p2, t2, lv2, block_elems_cap=cap)
        jax.block_until_ready(o2)
        m2, tt2 = reference(p2, t2, lv2)
        tol = 1e-3 if dtype == jnp.bfloat16 else 1e-5
        assert np.allclose(np.asarray(o2["task_losses"]), np.asarray(m2),
                           rtol=tol, atol=tol)
        assert np.allclose(float(o2["total_loss"]), float(tt2), rtol=tol, atol=tol)

    # Gradient path through the custom VJP vs. a pure-JAX reference.
    def loss_fn(p, t, lv):
        return adaptive_loss(p, t, lv)["total_loss"]

    def loss_ref(p, t, lv):
        mse = jnp.mean((p - t) ** 2, axis=0)
        return jnp.sum(jnp.exp(-lv) * mse + lv)

    gp, gl = jax.grad(loss_fn, argnums=(0, 2))(predictions, targets, log_vars)
    gp_r, gl_r = jax.grad(loss_ref, argnums=(0, 2))(predictions, targets, log_vars)
    jax.block_until_ready((gp, gl))
    assert np.allclose(np.asarray(gp), np.asarray(gp_r), rtol=1e-5, atol=1e-6)
    assert np.allclose(np.asarray(gl), np.asarray(gl_r), rtol=1e-5, atol=1e-6)

    print("KERNEL_OK")
</pallas_src>

<mosaic_0001>
module attributes {stable_mosaic.version = 11 : i64} {
  func.func @_sumsq_kernel(%arg0: i32, %arg1: i32, %arg2: memref<1x32x384xf32, #tpu.memory_space<vmem>>, %arg3: memref<1x32x384xf32, #tpu.memory_space<vmem>>, %arg4: memref<1x32x384xf32, #tpu.memory_space<vmem>>) attributes {dimension_semantics = [#tpu.dimension_semantics<parallel>, #tpu.dimension_semantics<arbitrary>], iteration_bounds = array<i64: 1, 1>, scalar_prefetch = 0 : i64, scratch_operands = 0 : i64, tpu.core_type = #tpu.core_type<tc>, window_params = [{transform_indices = @transform_0, window_bounds = array<i64: 1, 32, 384>}, {transform_indices = @transform_1, window_bounds = array<i64: 1, 32, 384>}, {transform_indices = @transform_2, window_bounds = array<i64: 1, 32, 384>}]} {
    %c0_i32 = arith.constant 0 : i32
    %0 = arith.cmpi eq, %arg1, %c0_i32 : i32
    %1 = arith.extui %0 : i1 to i32
    %c0_i32_0 = arith.constant 0 : i32
    %2 = arith.cmpi ne, %1, %c0_i32_0 : i32
    scf.if %2 {
      %cst_12 = arith.constant 0.000000e+00 : f32
      %14 = vector.broadcast %cst_12 : f32 to vector<32x384xf32>
      %c0_13 = arith.constant 0 : index
      %c0_14 = arith.constant 0 : index
      %c0_15 = arith.constant 0 : index
      %15 = vector.load %arg4[%c0_13, %c0_14, %c0_15] : memref<1x32x384xf32, #tpu.memory_space<vmem>>, vector<1x32x384xf32>
      %16 = vector.shape_cast %15 : vector<1x32x384xf32> to vector<32x384xf32>
      %17 = vector.shape_cast %14 : vector<32x384xf32> to vector<1x32x384xf32>
      tpu.vector_store %arg4[%c0_13, %c0_14, %c0_15], %17 {strides = array<i32>} : memref<1x32x384xf32, #tpu.memory_space<vmem>>, vector<1x32x384xf32>,
    } else {
    }
    %c0 = arith.constant 0 : index
    %c0_1 = arith.constant 0 : index
    %c0_2 = arith.constant 0 : index
    %3 = vector.load %arg2[%c0, %c0_1, %c0_2] : memref<1x32x384xf32, #tpu.memory_space<vmem>>, vector<1x32x384xf32>
    %c0_3 = arith.constant 0 : index
    %c0_4 = arith.constant 0 : index
    %c0_5 = arith.constant 0 : index
    %4 = vector.load %arg3[%c0_3, %c0_4, %c0_5] : memref<1x32x384xf32, #tpu.memory_space<vmem>>, vector<1x32x384xf32>
    %5 = arith.subf %3, %4 : vector<1x32x384xf32>
    %c0_6 = arith.constant 0 : index
    %c0_7 = arith.constant 0 : index
    %c0_8 = arith.constant 0 : index
    %6 = vector.load %arg4[%c0_6, %c0_7, %c0_8] : memref<1x32x384xf32, #tpu.memory_space<vmem>>, vector<1x32x384xf32>
    %7 = vector.shape_cast %6 : vector<1x32x384xf32> to vector<32x384xf32>
    %8 = arith.mulf %5, %5 : vector<1x32x384xf32>
    %cst = arith.constant dense<0.000000e+00> : vector<32x384xf32>
    %9 = vector.multi_reduction <add>, %8, %cst [0] : vector<1x32x384xf32> to vector<32x384xf32>
    %10 = arith.addf %7, %9 : vector<32x384xf32>
    %c0_9 = arith.constant 0 : index
    %c0_10 = arith.constant 0 : index
    %c0_11 = arith.constant 0 : index
    %11 = vector.load %arg4[%c0_9, %c0_10, %c0_11] : memref<1x32x384xf32, #tpu.memory_space<vmem>>, vector<1x32x384xf32>
    %12 = vector.shape_cast %11 : vector<1x32x384xf32> to vector<32x384xf32>
    %13 = vector.shape_cast %10 : vector<32x384xf32> to vector<1x32x384xf32>
    tpu.vector_store %arg4[%c0_9, %c0_10, %c0_11], %13 {strides = array<i32>} : memref<1x32x384xf32, #tpu.memory_space<vmem>>, vector<1x32x384xf32>,
    return
  }
  func.func @transform_0(%arg0: i32, %arg1: i32) -> (i32, i32, i32) {
    %c1_i32 = arith.constant 1 : i32
    %0 = arith.muli %arg0, %c1_i32 : i32
    %1 = arith.addi %0, %arg1 : i32
    %c0_i32 = arith.constant 0 : i32
    %c0_i32_0 = arith.constant 0 : i32
    %c0_i32_1 = arith.constant 0 : i32
    return %1, %c0_i32, %c0_i32_0 : i32, i32, i32
  }
  func.func @transform_1(%arg0: i32, %arg1: i32) -> (i32, i32, i32) {
    %c1_i32 = arith.constant 1 : i32
    %0 = arith.muli %arg0, %c1_i32 : i32
    %1 = arith.addi %0, %arg1 : i32
    %c0_i32 = arith.constant 0 : i32
    %c0_i32_0 = arith.constant 0 : i32
    %c0_i32_1 = arith.constant 0 : i32
    return %1, %c0_i32, %c0_i32_0 : i32, i32, i32
  }
  func.func @transform_2(%arg0: i32, %arg1: i32) -> (i32, i32, i32) {
    %c0_i32 = arith.constant 0 : i32
    %c0_i32_0 = arith.constant 0 : i32
    %c0_i32_1 = arith.constant 0 : i32
    return %arg0, %c0_i32, %c0_i32_0 : i32, i32, i32
  }
}

</mosaic_0001>

<bundles_post_ra>
// kernel: tpu_custom_call.1
= control target key start
LH: loop header
LB: loop body
LE: loop exit
PB: predicated region body
PF: predicated region fallthrough
CT: control target
= control target key end

     0   :  { %7 = vsyncpa [#allocation3], 0  ;;  %s308_s0 = inlined_call_operand.hbm [shape: f32[1,32,384], index: 0, kind: input, shape index: {}]   ;;  %s309_s1 = inlined_call_operand.hbm [shape: f32[1,32,384], index: 1, kind: input, shape index: {}]   ;;  %s310_s2 = inlined_call_operand.hbm [shape: f32[1,32,384], index: 2, kind: output, shape index: {}]  }
   0x1   :  { %8 = vsyncpa [#allocation6], 0 }
   0x2   :  { %9 = vsyncpa [#allocation4], 0  ;;  %s18_s11 = sshll.u32 %s308_s0, 4  ;;  %s270_s12 = smov [#allocation2]   ;;  %s19_s11 = int_to_ptr.hbm [resolvable:$true] %s18_s11 }
   0x3   :  { %s20_s13 = sshll.u32 %s270_s12, 4  ;;  %s35_s16 = sshll.u32 %s309_s1, 4  ;;  %s21_s13 = int_to_ptr.vmem [resolvable:$true] %s20_s13  ;;  %s36_s16 = int_to_ptr.hbm [resolvable:$true] %s35_s16 }
   0x4   :  { %s271_s17 = smov 384   ;;  %s272_s18 = smov 24  }
   0x5   :  { %26 = dma.hbm_to_vmem [thread:$0]  %s19_s11, 1536, %s21_s13, [#allocation3], %s271_s17, %s271_s17, %s272_s18  }
   0x6   :  { %s273_s19 = smov [#allocation5]  }
   0x7   :  { %s37_s20 = sshll.u32 %s273_s19, 4  ;;  %s38_s20 = int_to_ptr.vmem [resolvable:$true] %s37_s20 }
   0x8   :  { %43 = dma.hbm_to_vmem [thread:$0]  %s36_s16, 1536, %s38_s20, [#allocation6], %s271_s17, %s271_s17, %s272_s18  }
   0x9   :  { %264 = dma.done.wait [#allocation3], 1536  }
   0xa   :  { %265 = vsyncadd [#allocation3], 4294965760 }
   0xb   :  { %266 = dma.done.wait [#allocation6], 1536  }
   0xc   :  { %267 = vsyncadd [#allocation6], 4294965760  ;;  %v70_v0 = vld [vmem:[#allocation2] sm:$0xff]  ;;  %v71_v2 = vld [vmem:[#allocation2 + $0x8] sm:$0xff]  ;;  %s274_s0 = smov [#allocation7]   ;;  %s172_s23 = sshll.u32 %s310_s2, 4  ;;  %s173_s23 = int_to_ptr.hbm [resolvable:$true] %s172_s23 }
   0xd   :  { %v82_v1 = vld [vmem:[#allocation5] sm:$0xff]  ;;  %v83_v4 = vld [vmem:[#allocation5 + $0x8] sm:$0xff]  ;;  %v72_v5 = vld [vmem:[#allocation2 + $0x10] sm:$0xff]  ;;  %s170_s1 = sshll.u32 %s274_s0, 4  ;;  %s171_s1 = int_to_ptr.vmem [resolvable:$true] %s170_s1 }
   0xe   :  { %v94_v3 = vsub.f32 %v70_v0, %v82_v1  ;;  %v84_v6 = vld [vmem:[#allocation5 + $0x10] sm:$0xff]  ;;  %v95_v7 = vsub.f32 %v71_v2, %v83_v4  ;;  %v73_v9 = vld [vmem:[#allocation2 + $0x18] sm:$0xff]  ;;  %v74_v11 = vld [vmem:[#allocation2 + $0x20] sm:$0xff] }
   0xf   :  { %v96_v8 = vsub.f32 %v72_v5, %v84_v6  ;;  %v85_v10 = vld [vmem:[#allocation5 + $0x18] sm:$0xff]  ;;  %v86_v14 = vld [vmem:[#allocation5 + $0x20] sm:$0xff]  ;;  %v75_v15 = vld [vmem:[#allocation2 + $0x28] sm:$0xff] }
  0x10   :  { %v118_v12 = vmul.f32 %v94_v3, %v94_v3  ;;  %v97_v13 = vsub.f32 %v73_v9, %v85_v10  ;;  %v87_v16 = vld [vmem:[#allocation5 + $0x28] sm:$0xff]  ;;  %v119_v17 = vmul.f32 %v95_v7, %v95_v7  ;;  %v98_v19 = vsub.f32 %v74_v11, %v86_v14  ;;  %v76_v21 = vld [vmem:[#allocation2 + $0x30] sm:$0xff]  ;;  %v77_v23 = vld [vmem:[#allocation2 + $0x38] sm:$0xff] }
  0x11   :  { %v120_v18 = vmul.f32 %v96_v8, %v96_v8  ;;  %v99_v20 = vsub.f32 %v75_v15, %v87_v16  ;;  %v88_v22 = vld [vmem:[#allocation5 + $0x30] sm:$0xff]  ;;  %v89_v26 = vld [vmem:[#allocation5 + $0x38] sm:$0xff]  ;;  %v78_v27 = vld [vmem:[#allocation2 + $0x40] sm:$0xff] }
  0x12   :  { %v121_v24 = vmul.f32 %v97_v13, %v97_v13  ;;  %v100_v25 = vsub.f32 %v76_v21, %v88_v22  ;;  %v90_v28 = vld [vmem:[#allocation5 + $0x40] sm:$0xff]  ;;  %v122_v29 = vmul.f32 %v98_v19, %v98_v19  ;;  %v79_v31 = vld [vmem:[#allocation2 + $0x48] sm:$0xff]  ;;  %v80_v33 = vld [vmem:[#allocation2 + $0x50] sm:$0xff]  ;;  %154 = vst [vmem:[#allocation7] sm:$0xff] %v118_v12  ;;  %v101_v35 = vsub.f32 %v77_v23, %v89_v26 }
  0x13   :  { %v123_v30 = vmul.f32 %v99_v20, %v99_v20  ;;  %v91_v32 = vld [vmem:[#allocation5 + $0x48] sm:$0xff]  ;;  %v102_v36 = vsub.f32 %v78_v27, %v90_v28  ;;  %v92_v37 = vld [vmem:[#allocation5 + $0x50] sm:$0xff]  ;;  %v81_v38 = vld [vmem:[#allocation2 + $0x58] sm:$0xff]  ;;  %155 = vst [vmem:[#allocation7 + $0x8] sm:$0xff] %v119_v17 }
  0x14   :  { %v124_v34 = vmul.f32 %v100_v25, %v100_v25  ;;  %v93_v39 = vld [vmem:[#allocation5 + $0x58] sm:$0xff]  ;;  %v103_v40 = vsub.f32 %v79_v31, %v91_v32  ;;  %v104_v41 = vsub.f32 %v80_v33, %v92_v37  ;;  %156 = vst [vmem:[#allocation7 + $0x10] sm:$0xff] %v120_v18  ;;  %v125_v42 = vmul.f32 %v101_v35, %v101_v35 }
  0x15   :  { %v126_v43 = vmul.f32 %v102_v36, %v102_v36  ;;  %v105_v44 = vsub.f32 %v81_v38, %v93_v39  ;;  %157 = vst [vmem:[#allocation7 + $0x18] sm:$0xff] %v121_v24 }
  0x16   :  { %v127_v45 = vmul.f32 %v103_v40, %v103_v40  ;;  %v128_v46 = vmul.f32 %v104_v41, %v104_v41  ;;  %158 = vst [vmem:[#allocation7 + $0x20] sm:$0xff] %v122_v29 }
  0x17   :  { %v129_v47 = vmul.f32 %v105_v44, %v105_v44  ;;  %159 = vst [vmem:[#allocation7 + $0x28] sm:$0xff] %v123_v30 }
  0x18   :  { %160 = vst [vmem:[#allocation7 + $0x30] sm:$0xff] %v124_v34 }
  0x19   :  { %161 = vst [vmem:[#allocation7 + $0x38] sm:$0xff] %v125_v42 }
  0x1a   :  { %162 = vst [vmem:[#allocation7 + $0x40] sm:$0xff] %v126_v43 }
  0x1b   :  { %163 = vst [vmem:[#allocation7 + $0x48] sm:$0xff] %v127_v45 }
  0x1c   :  { %164 = vst [vmem:[#allocation7 + $0x50] sm:$0xff] %v128_v46 }
  0x1d   :  { %165 = vst [vmem:[#allocation7 + $0x58] sm:$0xff] %v129_v47 }
  0x1e   :  { %178 = dma.vmem_to_hbm [thread:$0]  %s171_s1, 1536, %s173_s23, [#allocation4], %s271_s17, %s271_s17, %s272_s18  }
  0x1f   :  { %268 = dma.done.wait [#allocation4], 1536  }
  0x20   :  { %269 = vsyncadd [#allocation4], 4294965760 }
  0x21   :  { %183 = vsyncpa [#allocation3], 1 }
  0x22   :  { %184 = vsyncpa [#allocation6], 1 }
  0x23   :  { %185 = vsyncpa [#allocation4], 1 }

</bundles_post_ra>
